<compile_context>
chip_gen: v6e
topology: v6e:2x2x1
jax: 0.10.0
libtpu: 0.0.40
codegen_flags: <defaults>
</compile_context>

<pallas_src>
import jax
import jax.numpy as jnp
from jax.experimental import pallas as pl
from jax.experimental.pallas import tpu as pltpu
import numpy as np

# ----------------------------- model dims -----------------------------------
B = 2            # batch
T = 8            # sequence length
IN_DIM = 16      # GRU input size
HIDDEN = 32      # GRU hidden size
N_CLASSES = 4

G = 3 * HIDDEN               # 96: concatenated gates r|z|n
# Packed weight block row layout (all column slices start at lane 0):
ROW_WI = 0                   # rows  0:16  -> W_i  [IN_DIM, 96]
ROW_WH = IN_DIM              # rows 16:48  -> W_h  [HIDDEN, 96]
ROW_W12 = IN_DIM + HIDDEN    # rows 48:80  -> W12  [HIDDEN, N_CLASSES]
ROW_BI = IN_DIM + 2 * HIDDEN       # row 80 -> gi bias [96] (b_ih_r+b_hh_r | b_ih_z+b_hh_z | b_ih_n)
ROW_BHN = ROW_BI + 1               # row 81 -> b_hh_n [32]
ROW_B12 = ROW_BI + 2               # row 82 -> fused classifier bias [4]
PACK_ROWS = 88               # 83 used rows, padded to a multiple of 8


# ----------------------------- Pallas kernel --------------------------------
def gru_classifier_kernel(x_ref,     # [T*B, IN_DIM]  time-major rows (t*B .. t*B+B-1 = step t)
                          w_ref,     # [PACK_ROWS, 128]  packed weights/biases (layout above)
                          out_ref):  # [B, N_CLASSES]
    H = HIDDEN

    # --- one-time unpack of the packed parameter block (off the serial path) ---
    wi = w_ref[ROW_WI:ROW_WI + IN_DIM, 0:G]                    # [16, 96]
    wh = w_ref[ROW_WH:ROW_WH + H, 0:G]                         # [32, 96]
    w12 = w_ref[ROW_W12:ROW_W12 + H, 0:N_CLASSES]              # [32, 4]
    b_i = w_ref[ROW_BI:ROW_BI + 1, 0:G]                        # [1, 96]
    b_hn = w_ref[ROW_BHN:ROW_BHN + 1, 0:H]                     # [1, 32]
    b12 = w_ref[ROW_B12:ROW_B12 + 1, 0:N_CLASSES]              # [1, 4]

    # --- hoisted input projection: ONE matmul + ONE bias add for all T steps ---
    x = x_ref[...]                                             # [T*B, 16]
    gi = jnp.dot(x, wi, preferred_element_type=jnp.float32) + b_i   # [T*B, 96]
    gi_rz = gi[:, 0:2 * H]                                     # [T*B, 64]  (r|z)
    gi_n = gi[:, 2 * H:G]                                      # [T*B, 32]  (n)

    # Hoisted broadcast (JAX does not CSE broadcast_in_dim inside the unrolled loop).
    b_hn_b = jnp.broadcast_to(b_hn, (B, H))                    # [B, 32]

    # --- peeled timestep 0: h == 0 -> gh == 0, no recurrent matmul needed ---
    rz0 = jax.nn.sigmoid(gi_rz[0:B, :])                        # [B, 64]
    r0 = rz0[:, 0:H]
    z0 = rz0[:, H:2 * H]
    n0 = jnp.tanh(gi_n[0:B, :] + r0 * b_hn_b)
    h = (1.0 - z0) * n0                                        # + z0 * 0

    # --- steps 1..T-1: ONE fused [B,32]@[32,96] MXU round trip per step ---
    # TODO(synk): optionally keep W_h resident in the MXU via
    # pltpu.matmul_push_rhs / matmul_acc_lhs / matmul_pop for the 7 dependent steps.
    for t in range(1, T):
        lo = t * B
        gh = jnp.dot(h, wh, preferred_element_type=jnp.float32)       # [B, 96]
        rz = jax.nn.sigmoid(gi_rz[lo:lo + B, :] + gh[:, 0:2 * H])     # [B, 64] one EUP push
        r = rz[:, 0:H]
        z = rz[:, H:2 * H]
        n = jnp.tanh(gi_n[lo:lo + B, :] + r * (gh[:, 2 * H:G] + b_hn_b))
        h = (1.0 - z) * n + z * h

    # --- fused classifier: Linear(H,H) -> Linear(H,C) collapsed to one matmul ---
    out_ref[...] = jnp.dot(h, w12, preferred_element_type=jnp.float32) + b12


# ----------------------------- one-time param prep ---------------------------
def prepare_params(params):
    """PyTorch-layout params -> single packed [PACK_ROWS,128] block. Call ONCE."""
    w_ih, w_hh, b_ih, b_hh, w1, b1, w2, b2 = params
    H = HIDDEN

    wih_t = jnp.transpose(w_ih).astype(jnp.float32)            # [IN_DIM, 96]  gates r|z|n
    whh_t = jnp.transpose(w_hh).astype(jnp.float32)            # [H, 96]

    # r/z biases pre-folded (b_ih + b_hh); n slot carries only b_ih_n here,
    # b_hh_n stays separate (it must be scaled by r inside the kernel).
    b_i = jnp.concatenate([b_ih[:2 * H] + b_hh[:2 * H], b_ih[2 * H:]]).astype(jnp.float32)  # [96]
    b_hn = b_hh[2 * H:].astype(jnp.float32)                    # [32]

    # Fused classifier (no nonlinearity between the two Linears):
    #   out = h @ W1^T @ W2^T + (b1 @ W2^T + b2)
    w12 = (jnp.transpose(w1) @ jnp.transpose(w2)).astype(jnp.float32)   # [H, N_CLASSES]
    b12 = (b1 @ jnp.transpose(w2) + b2).astype(jnp.float32)             # [N_CLASSES]

    wpack = jnp.zeros((PACK_ROWS, 128), jnp.float32)
    wpack = wpack.at[ROW_WI:ROW_WI + IN_DIM, 0:G].set(wih_t)
    wpack = wpack.at[ROW_WH:ROW_WH + H, 0:G].set(whh_t)
    wpack = wpack.at[ROW_W12:ROW_W12 + H, 0:N_CLASSES].set(w12)
    wpack = wpack.at[ROW_BI, 0:G].set(b_i)
    wpack = wpack.at[ROW_BHN, 0:H].set(b_hn)
    wpack = wpack.at[ROW_B12, 0:N_CLASSES].set(b12)
    return wpack


# ----------------------------- wrapper ---------------------------------------
def _cost_estimate():
    flops = (2 * T * B * IN_DIM * G                    # hoisted input projection
             + 2 * (T - 1) * B * HIDDEN * G            # fused recurrent matmuls (t=0 peeled)
             + 2 * B * HIDDEN * N_CLASSES              # fused classifier
             + 10 * T * B * HIDDEN)                    # gate elementwise
    transcendentals = 3 * T * B * HIDDEN               # 2 sigmoid + 1 tanh per step
    bytes_accessed = 4 * (T * B * IN_DIM               # x
                          + PACK_ROWS * 128            # packed weights/biases
                          + B * N_CLASSES)             # output
    return pl.CostEstimate(flops=flops, transcendentals=transcendentals,
                           bytes_accessed=bytes_accessed)


@jax.jit
def gru_classifier_forward(x, wpack):
    """x: [B, T, IN_DIM] float32 (batch_first, like PyTorch). Returns [B, N_CLASSES]."""
    # Time-major 2-D layout: rows [t*B, t*B+B) hold timestep t.
    # (For production, carry x in time-major layout upstream to drop this op.)
    x2d = jnp.transpose(x, (1, 0, 2)).reshape(T * B, IN_DIM).astype(jnp.float32)

    vmem = pl.BlockSpec(memory_space=pltpu.MemorySpace.VMEM)
    return pl.pallas_call(
        gru_classifier_kernel,
        out_shape=jax.ShapeDtypeStruct((B, N_CLASSES), jnp.float32),
        in_specs=[vmem, vmem],
        out_specs=vmem,
        cost_estimate=_cost_estimate(),
    )(x2d, wpack)


# ----------------------------- pure-JAX reference ----------------------------
def reference_forward(x, params):
    w_ih, w_hh, b_ih, b_hh, w1, b1, w2, b2 = params
    h = jnp.zeros((x.shape[0], HIDDEN), jnp.float32)
    for t in range(x.shape[1]):
        xt = x[:, t, :]
        gi = xt @ w_ih.T + b_ih
        gh = h @ w_hh.T + b_hh
        r = jax.nn.sigmoid(gi[:, 0:HIDDEN] + gh[:, 0:HIDDEN])
        z = jax.nn.sigmoid(gi[:, HIDDEN:2 * HIDDEN] + gh[:, HIDDEN:2 * HIDDEN])
        n = jnp.tanh(gi[:, 2 * HIDDEN:] + r * gh[:, 2 * HIDDEN:])
        h = (1.0 - z) * n + z * h
    hid = h @ w1.T + b1
    return hid @ w2.T + b2


# ----------------------------- params ----------------------------------------
def init_params(key):
    ks = jax.random.split(key, 8)
    bound = 1.0 / np.sqrt(HIDDEN)
    u = lambda k, shape: jax.random.uniform(k, shape, jnp.float32, -bound, bound)
    w_ih = u(ks[0], (3 * HIDDEN, IN_DIM))     # nn.GRU weight_ih_l0
    w_hh = u(ks[1], (3 * HIDDEN, HIDDEN))     # nn.GRU weight_hh_l0
    b_ih = u(ks[2], (3 * HIDDEN,))
    b_hh = u(ks[3], (3 * HIDDEN,))
    w1 = u(ks[4], (HIDDEN, HIDDEN))           # classifier[0]: Linear(H, H)
    b1 = u(ks[5], (HIDDEN,))
    w2 = u(ks[6], (N_CLASSES, HIDDEN))        # classifier[1]: Linear(H, n_classes)
    b2 = u(ks[7], (N_CLASSES,))
    return (w_ih, w_hh, b_ih, b_hh, w1, b1, w2, b2)


if __name__ == "__main__":
    key = jax.random.PRNGKey(0)
    k_x, k_p = jax.random.split(key)
    x = jax.random.normal(k_x, (B, T, IN_DIM), jnp.float32)
    params = init_params(k_p)

    wpack = prepare_params(params)            # one-time weight transform / packing
    wpack = jax.block_until_ready(wpack)

    out = gru_classifier_forward(x, wpack)
    out = jax.block_until_ready(out)

    ref = reference_forward(x, params)
    np.testing.assert_allclose(np.asarray(out), np.asarray(ref), rtol=1e-4, atol=1e-4)

    print("KERNEL_OK")
</pallas_src>

<mosaic_0001>
module attributes {stable_mosaic.version = 11 : i64} {
  func.func @gru_classifier_kernel(%arg0: memref<16x16xf32, #tpu.memory_space<vmem>>, %arg1: memref<88x128xf32, #tpu.memory_space<vmem>>, %arg2: memref<2x4xf32, #tpu.memory_space<vmem>>) attributes {dimension_semantics = [], scalar_prefetch = 0 : i64, scratch_operands = 0 : i64, tpu.core_type = #tpu.core_type<tc>} {
    %c0 = arith.constant 0 : index
    %c0_0 = arith.constant 0 : index
    %0 = vector.load %arg1[%c0, %c0_0] : memref<88x128xf32, #tpu.memory_space<vmem>>, vector<16x96xf32>
    %c16 = arith.constant 16 : index
    %c0_1 = arith.constant 0 : index
    %1 = vector.load %arg1[%c16, %c0_1] : memref<88x128xf32, #tpu.memory_space<vmem>>, vector<32x96xf32>
    %c48 = arith.constant 48 : index
    %c0_2 = arith.constant 0 : index
    %2 = vector.load %arg1[%c48, %c0_2] : memref<88x128xf32, #tpu.memory_space<vmem>>, vector<32x4xf32>
    %c80 = arith.constant 80 : index
    %c0_3 = arith.constant 0 : index
    %3 = vector.load %arg1[%c80, %c0_3] : memref<88x128xf32, #tpu.memory_space<vmem>>, vector<1x96xf32>
    %c81 = arith.constant 81 : index
    %c0_4 = arith.constant 0 : index
    %4 = vector.load %arg1[%c81, %c0_4] : memref<88x128xf32, #tpu.memory_space<vmem>>, vector<1x32xf32>
    %c82 = arith.constant 82 : index
    %c0_5 = arith.constant 0 : index
    %5 = vector.load %arg1[%c82, %c0_5] : memref<88x128xf32, #tpu.memory_space<vmem>>, vector<1x4xf32>
    %c0_6 = arith.constant 0 : index
    %c0_7 = arith.constant 0 : index
    %6 = vector.load %arg0[%c0_6, %c0_7] : memref<16x16xf32, #tpu.memory_space<vmem>>, vector<16x16xf32>
    %cst = arith.constant dense<0.000000e+00> : vector<16x96xf32>
    %7 = tpu.matmul %6, %0, %cst {dimension_numbers = #tpu.dot_dimension_numbers<[1], [0], [0], [1], [0, 0, 1, 1], [], []>} : vector<16x16xf32>, vector<16x96xf32>, vector<16x96xf32> -> vector<16x96xf32>
    %8 = vector.broadcast %3 : vector<1x96xf32> to vector<16x96xf32>
    %9 = arith.addf %7, %8 : vector<16x96xf32>
    %10 = vector.extract_strided_slice %9 {offsets = [0, 0], sizes = [16, 64], strides = [1, 1]} : vector<16x96xf32> to vector<16x64xf32>
    %11 = vector.extract_strided_slice %9 {offsets = [0, 64], sizes = [16, 32], strides = [1, 1]} : vector<16x96xf32> to vector<16x32xf32>
    %12 = vector.shape_cast %4 : vector<1x32xf32> to vector<1x32xf32>
    %13 = vector.broadcast %12 : vector<1x32xf32> to vector<2x32xf32>
    %14 = vector.extract_strided_slice %10 {offsets = [0, 0], sizes = [2, 64], strides = [1, 1]} : vector<16x64xf32> to vector<2x64xf32>
    %15 = arith.negf %14 : vector<2x64xf32>
    %16 = math.exp %15 : vector<2x64xf32>
    %cst_8 = arith.constant 1.000000e+00 : f32
    %17 = vector.broadcast %cst_8 : f32 to vector<2x64xf32>
    %18 = arith.addf %17, %16 : vector<2x64xf32>
    %19 = arith.divf %17, %18 : vector<2x64xf32>
    %20 = vector.extract_strided_slice %19 {offsets = [0, 0], sizes = [2, 32], strides = [1, 1]} : vector<2x64xf32> to vector<2x32xf32>
    %21 = vector.extract_strided_slice %19 {offsets = [0, 32], sizes = [2, 32], strides = [1, 1]} : vector<2x64xf32> to vector<2x32xf32>
    %22 = vector.extract_strided_slice %11 {offsets = [0, 0], sizes = [2, 32], strides = [1, 1]} : vector<16x32xf32> to vector<2x32xf32>
    %23 = arith.mulf %20, %13 : vector<2x32xf32>
    %24 = arith.addf %22, %23 : vector<2x32xf32>
    %25 = math.tanh %24 : vector<2x32xf32>
    %cst_9 = arith.constant 1.000000e+00 : f32
    %26 = vector.broadcast %cst_9 : f32 to vector<2x32xf32>
    %27 = arith.subf %26, %21 : vector<2x32xf32>
    %28 = arith.mulf %27, %25 : vector<2x32xf32>
    %cst_10 = arith.constant dense<0.000000e+00> : vector<2x96xf32>
    %29 = tpu.matmul %28, %1, %cst_10 {dimension_numbers = #tpu.dot_dimension_numbers<[1], [0], [0], [1], [0, 0, 1, 1], [], []>} : vector<2x32xf32>, vector<32x96xf32>, vector<2x96xf32> -> vector<2x96xf32>
    %30 = vector.extract_strided_slice %10 {offsets = [2, 0], sizes = [2, 64], strides = [1, 1]} : vector<16x64xf32> to vector<2x64xf32>
    %31 = vector.extract_strided_slice %29 {offsets = [0, 0], sizes = [2, 64], strides = [1, 1]} : vector<2x96xf32> to vector<2x64xf32>
    %32 = arith.addf %30, %31 : vector<2x64xf32>
    %33 = arith.negf %32 : vector<2x64xf32>
    %34 = math.exp %33 : vector<2x64xf32>
    %cst_11 = arith.constant 1.000000e+00 : f32
    %35 = vector.broadcast %cst_11 : f32 to vector<2x64xf32>
    %36 = arith.addf %35, %34 : vector<2x64xf32>
    %37 = arith.divf %35, %36 : vector<2x64xf32>
    %38 = vector.extract_strided_slice %37 {offsets = [0, 0], sizes = [2, 32], strides = [1, 1]} : vector<2x64xf32> to vector<2x32xf32>
    %39 = vector.extract_strided_slice %37 {offsets = [0, 32], sizes = [2, 32], strides = [1, 1]} : vector<2x64xf32> to vector<2x32xf32>
    %40 = vector.extract_strided_slice %11 {offsets = [2, 0], sizes = [2, 32], strides = [1, 1]} : vector<16x32xf32> to vector<2x32xf32>
    %41 = vector.extract_strided_slice %29 {offsets = [0, 64], sizes = [2, 32], strides = [1, 1]} : vector<2x96xf32> to vector<2x32xf32>
    %42 = arith.addf %41, %13 : vector<2x32xf32>
    %43 = arith.mulf %38, %42 : vector<2x32xf32>
    %44 = arith.addf %40, %43 : vector<2x32xf32>
    %45 = math.tanh %44 : vector<2x32xf32>
    %cst_12 = arith.constant 1.000000e+00 : f32
    %46 = vector.broadcast %cst_12 : f32 to vector<2x32xf32>
    %47 = arith.subf %46, %39 : vector<2x32xf32>
    %48 = arith.mulf %47, %45 : vector<2x32xf32>
    %49 = arith.mulf %39, %28 : vector<2x32xf32>
    %50 = arith.addf %48, %49 : vector<2x32xf32>
    %cst_13 = arith.constant dense<0.000000e+00> : vector<2x96xf32>
    %51 = tpu.matmul %50, %1, %cst_13 {dimension_numbers = #tpu.dot_dimension_numbers<[1], [0], [0], [1], [0, 0, 1, 1], [], []>} : vector<2x32xf32>, vector<32x96xf32>, vector<2x96xf32> -> vector<2x96xf32>
    %52 = vector.extract_strided_slice %10 {offsets = [4, 0], sizes = [2, 64], strides = [1, 1]} : vector<16x64xf32> to vector<2x64xf32>
    %53 = vector.extract_strided_slice %51 {offsets = [0, 0], sizes = [2, 64], strides = [1, 1]} : vector<2x96xf32> to vector<2x64xf32>
    %54 = arith.addf %52, %53 : vector<2x64xf32>
    %55 = arith.negf %54 : vector<2x64xf32>
    %56 = math.exp %55 : vector<2x64xf32>
    %cst_14 = arith.constant 1.000000e+00 : f32
    %57 = vector.broadcast %cst_14 : f32 to vector<2x64xf32>
    %58 = arith.addf %57, %56 : vector<2x64xf32>
    %59 = arith.divf %57, %58 : vector<2x64xf32>
    %60 = vector.extract_strided_slice %59 {offsets = [0, 0], sizes = [2, 32], strides = [1, 1]} : vector<2x64xf32> to vector<2x32xf32>
    %61 = vector.extract_strided_slice %59 {offsets = [0, 32], sizes = [2, 32], strides = [1, 1]} : vector<2x64xf32> to vector<2x32xf32>
    %62 = vector.extract_strided_slice %11 {offsets = [4, 0], sizes = [2, 32], strides = [1, 1]} : vector<16x32xf32> to vector<2x32xf32>
    %63 = vector.extract_strided_slice %51 {offsets = [0, 64], sizes = [2, 32], strides = [1, 1]} : vector<2x96xf32> to vector<2x32xf32>
    %64 = arith.addf %63, %13 : vector<2x32xf32>
    %65 = arith.mulf %60, %64 : vector<2x32xf32>
    %66 = arith.addf %62, %65 : vector<2x32xf32>
    %67 = math.tanh %66 : vector<2x32xf32>
    %cst_15 = arith.constant 1.000000e+00 : f32
    %68 = vector.broadcast %cst_15 : f32 to vector<2x32xf32>
    %69 = arith.subf %68, %61 : vector<2x32xf32>
    %70 = arith.mulf %69, %67 : vector<2x32xf32>
    %71 = arith.mulf %61, %50 : vector<2x32xf32>
    %72 = arith.addf %70, %71 : vector<2x32xf32>
    %cst_16 = arith.constant dense<0.000000e+00> : vector<2x96xf32>
    %73 = tpu.matmul %72, %1, %cst_16 {dimension_numbers = #tpu.dot_dimension_numbers<[1], [0], [0], [1], [0, 0, 1, 1], [], []>} : vector<2x32xf32>, vector<32x96xf32>, vector<2x96xf32> -> vector<2x96xf32>
    %74 = vector.extract_strided_slice %10 {offsets = [6, 0], sizes = [2, 64], strides = [1, 1]} : vector<16x64xf32> to vector<2x64xf32>
    %75 = vector.extract_strided_slice %73 {offsets = [0, 0], sizes = [2, 64], strides = [1, 1]} : vector<2x96xf32> to vector<2x64xf32>
    %76 = arith.addf %74, %75 : vector<2x64xf32>
    %77 = arith.negf %76 : vector<2x64xf32>
    %78 = math.exp %77 : vector<2x64xf32>
    %cst_17 = arith.constant 1.000000e+00 : f32
    %79 = vector.broadcast %cst_17 : f32 to vector<2x64xf32>
    %80 = arith.addf %79, %78 : vector<2x64xf32>
    %81 = arith.divf %79, %80 : vector<2x64xf32>
    %82 = vector.extract_strided_slice %81 {offsets = [0, 0], sizes = [2, 32], strides = [1, 1]} : vector<2x64xf32> to vector<2x32xf32>
    %83 = vector.extract_strided_slice %81 {offsets = [0, 32], sizes = [2, 32], strides = [1, 1]} : vector<2x64xf32> to vector<2x32xf32>
    %84 = vector.extract_strided_slice %11 {offsets = [6, 0], sizes = [2, 32], strides = [1, 1]} : vector<16x32xf32> to vector<2x32xf32>
    %85 = vector.extract_strided_slice %73 {offsets = [0, 64], sizes = [2, 32], strides = [1, 1]} : vector<2x96xf32> to vector<2x32xf32>
    %86 = arith.addf %85, %13 : vector<2x32xf32>
    %87 = arith.mulf %82, %86 : vector<2x32xf32>
    %88 = arith.addf %84, %87 : vector<2x32xf32>
    %89 = math.tanh %88 : vector<2x32xf32>
    %cst_18 = arith.constant 1.000000e+00 : f32
    %90 = vector.broadcast %cst_18 : f32 to vector<2x32xf32>
    %91 = arith.subf %90, %83 : vector<2x32xf32>
    %92 = arith.mulf %91, %89 : vector<2x32xf32>
    %93 = arith.mulf %83, %72 : vector<2x32xf32>
    %94 = arith.addf %92, %93 : vector<2x32xf32>
    %cst_19 = arith.constant dense<0.000000e+00> : vector<2x96xf32>
    %95 = tpu.matmul %94, %1, %cst_19 {dimension_numbers = #tpu.dot_dimension_numbers<[1], [0], [0], [1], [0, 0, 1, 1], [], []>} : vector<2x32xf32>, vector<32x96xf32>, vector<2x96xf32> -> vector<2x96xf32>
    %96 = vector.extract_strided_slice %10 {offsets = [8, 0], sizes = [2, 64], strides = [1, 1]} : vector<16x64xf32> to vector<2x64xf32>
    %97 = vector.extract_strided_slice %95 {offsets = [0, 0], sizes = [2, 64], strides = [1, 1]} : vector<2x96xf32> to vector<2x64xf32>
    %98 = arith.addf %96, %97 : vector<2x64xf32>
    %99 = arith.negf %98 : vector<2x64xf32>
    %100 = math.exp %99 : vector<2x64xf32>
    %cst_20 = arith.constant 1.000000e+00 : f32
    %101 = vector.broadcast %cst_20 : f32 to vector<2x64xf32>
    %102 = arith.addf %101, %100 : vector<2x64xf32>
    %103 = arith.divf %101, %102 : vector<2x64xf32>
    %104 = vector.extract_strided_slice %103 {offsets = [0, 0], sizes = [2, 32], strides = [1, 1]} : vector<2x64xf32> to vector<2x32xf32>
    %105 = vector.extract_strided_slice %103 {offsets = [0, 32], sizes = [2, 32], strides = [1, 1]} : vector<2x64xf32> to vector<2x32xf32>
    %106 = vector.extract_strided_slice %11 {offsets = [8, 0], sizes = [2, 32], strides = [1, 1]} : vector<16x32xf32> to vector<2x32xf32>
    %107 = vector.extract_strided_slice %95 {offsets = [0, 64], sizes = [2, 32], strides = [1, 1]} : vector<2x96xf32> to vector<2x32xf32>
    %108 = arith.addf %107, %13 : vector<2x32xf32>
    %109 = arith.mulf %104, %108 : vector<2x32xf32>
    %110 = arith.addf %106, %109 : vector<2x32xf32>
    %111 = math.tanh %110 : vector<2x32xf32>
    %cst_21 = arith.constant 1.000000e+00 : f32
    %112 = vector.broadcast %cst_21 : f32 to vector<2x32xf32>
    %113 = arith.subf %112, %105 : vector<2x32xf32>
    %114 = arith.mulf %113, %111 : vector<2x32xf32>
    %115 = arith.mulf %105, %94 : vector<2x32xf32>
    %116 = arith.addf %114, %115 : vector<2x32xf32>
    %cst_22 = arith.constant dense<0.000000e+00> : vector<2x96xf32>
    %117 = tpu.matmul %116, %1, %cst_22 {dimension_numbers = #tpu.dot_dimension_numbers<[1], [0], [0], [1], [0, 0, 1, 1], [], []>} : vector<2x32xf32>, vector<32x96xf32>, vector<2x96xf32> -> vector<2x96xf32>
    %118 = vector.extract_strided_slice %10 {offsets = [10, 0], sizes = [2, 64], strides = [1, 1]} : vector<16x64xf32> to vector<2x64xf32>
    %119 = vector.extract_strided_slice %117 {offsets = [0, 0], sizes = [2, 64], strides = [1, 1]} : vector<2x96xf32> to vector<2x64xf32>
    %120 = arith.addf %118, %119 : vector<2x64xf32>
    %121 = arith.negf %120 : vector<2x64xf32>
    %122 = math.exp %121 : vector<2x64xf32>
    %cst_23 = arith.constant 1.000000e+00 : f32
    %123 = vector.broadcast %cst_23 : f32 to vector<2x64xf32>
    %124 = arith.addf %123, %122 : vector<2x64xf32>
    %125 = arith.divf %123, %124 : vector<2x64xf32>
    %126 = vector.extract_strided_slice %125 {offsets = [0, 0], sizes = [2, 32], strides = [1, 1]} : vector<2x64xf32> to vector<2x32xf32>
    %127 = vector.extract_strided_slice %125 {offsets = [0, 32], sizes = [2, 32], strides = [1, 1]} : vector<2x64xf32> to vector<2x32xf32>
    %128 = vector.extract_strided_slice %11 {offsets = [10, 0], sizes = [2, 32], strides = [1, 1]} : vector<16x32xf32> to vector<2x32xf32>
    %129 = vector.extract_strided_slice %117 {offsets = [0, 64], sizes = [2, 32], strides = [1, 1]} : vector<2x96xf32> to vector<2x32xf32>
    %130 = arith.addf %129, %13 : vector<2x32xf32>
    %131 = arith.mulf %126, %130 : vector<2x32xf32>
    %132 = arith.addf %128, %131 : vector<2x32xf32>
    %133 = math.tanh %132 : vector<2x32xf32>
    %cst_24 = arith.constant 1.000000e+00 : f32
    %134 = vector.broadcast %cst_24 : f32 to vector<2x32xf32>
    %135 = arith.subf %134, %127 : vector<2x32xf32>
    %136 = arith.mulf %135, %133 : vector<2x32xf32>
    %137 = arith.mulf %127, %116 : vector<2x32xf32>
    %138 = arith.addf %136, %137 : vector<2x32xf32>
    %cst_25 = arith.constant dense<0.000000e+00> : vector<2x96xf32>
    %139 = tpu.matmul %138, %1, %cst_25 {dimension_numbers = #tpu.dot_dimension_numbers<[1], [0], [0], [1], [0, 0, 1, 1], [], []>} : vector<2x32xf32>, vector<32x96xf32>, vector<2x96xf32> -> vector<2x96xf32>
    %140 = vector.extract_strided_slice %10 {offsets = [12, 0], sizes = [2, 64], strides = [1, 1]} : vector<16x64xf32> to vector<2x64xf32>
    %141 = vector.extract_strided_slice %139 {offsets = [0, 0], sizes = [2, 64], strides = [1, 1]} : vector<2x96xf32> to vector<2x64xf32>
    %142 = arith.addf %140, %141 : vector<2x64xf32>
    %143 = arith.negf %142 : vector<2x64xf32>
    %144 = math.exp %143 : vector<2x64xf32>
    %cst_26 = arith.constant 1.000000e+00 : f32
    %145 = vector.broadcast %cst_26 : f32 to vector<2x64xf32>
    %146 = arith.addf %145, %144 : vector<2x64xf32>
    %147 = arith.divf %145, %146 : vector<2x64xf32>
    %148 = vector.extract_strided_slice %147 {offsets = [0, 0], sizes = [2, 32], strides = [1, 1]} : vector<2x64xf32> to vector<2x32xf32>
    %149 = vector.extract_strided_slice %147 {offsets = [0, 32], sizes = [2, 32], strides = [1, 1]} : vector<2x64xf32> to vector<2x32xf32>
    %150 = vector.extract_strided_slice %11 {offsets = [12, 0], sizes = [2, 32], strides = [1, 1]} : vector<16x32xf32> to vector<2x32xf32>
    %151 = vector.extract_strided_slice %139 {offsets = [0, 64], sizes = [2, 32], strides = [1, 1]} : vector<2x96xf32> to vector<2x32xf32>
    %152 = arith.addf %151, %13 : vector<2x32xf32>
    %153 = arith.mulf %148, %152 : vector<2x32xf32>
    %154 = arith.addf %150, %153 : vector<2x32xf32>
    %155 = math.tanh %154 : vector<2x32xf32>
    %cst_27 = arith.constant 1.000000e+00 : f32
    %156 = vector.broadcast %cst_27 : f32 to vector<2x32xf32>
    %157 = arith.subf %156, %149 : vector<2x32xf32>
    %158 = arith.mulf %157, %155 : vector<2x32xf32>
    %159 = arith.mulf %149, %138 : vector<2x32xf32>
    %160 = arith.addf %158, %159 : vector<2x32xf32>
    %cst_28 = arith.constant dense<0.000000e+00> : vector<2x96xf32>
    %161 = tpu.matmul %160, %1, %cst_28 {dimension_numbers = #tpu.dot_dimension_numbers<[1], [0], [0], [1], [0, 0, 1, 1], [], []>} : vector<2x32xf32>, vector<32x96xf32>, vector<2x96xf32> -> vector<2x96xf32>
    %162 = vector.extract_strided_slice %10 {offsets = [14, 0], sizes = [2, 64], strides = [1, 1]} : vector<16x64xf32> to vector<2x64xf32>
    %163 = vector.extract_strided_slice %161 {offsets = [0, 0], sizes = [2, 64], strides = [1, 1]} : vector<2x96xf32> to vector<2x64xf32>
    %164 = arith.addf %162, %163 : vector<2x64xf32>
    %165 = arith.negf %164 : vector<2x64xf32>
    %166 = math.exp %165 : vector<2x64xf32>
    %cst_29 = arith.constant 1.000000e+00 : f32
    %167 = vector.broadcast %cst_29 : f32 to vector<2x64xf32>
    %168 = arith.addf %167, %166 : vector<2x64xf32>
    %169 = arith.divf %167, %168 : vector<2x64xf32>
    %170 = vector.extract_strided_slice %169 {offsets = [0, 0], sizes = [2, 32], strides = [1, 1]} : vector<2x64xf32> to vector<2x32xf32>
    %171 = vector.extract_strided_slice %169 {offsets = [0, 32], sizes = [2, 32], strides = [1, 1]} : vector<2x64xf32> to vector<2x32xf32>
    %172 = vector.extract_strided_slice %11 {offsets = [14, 0], sizes = [2, 32], strides = [1, 1]} : vector<16x32xf32> to vector<2x32xf32>
    %173 = vector.extract_strided_slice %161 {offsets = [0, 64], sizes = [2, 32], strides = [1, 1]} : vector<2x96xf32> to vector<2x32xf32>
    %174 = arith.addf %173, %13 : vector<2x32xf32>
    %175 = arith.mulf %170, %174 : vector<2x32xf32>
    %176 = arith.addf %172, %175 : vector<2x32xf32>
    %177 = math.tanh %176 : vector<2x32xf32>
    %cst_30 = arith.constant 1.000000e+00 : f32
    %178 = vector.broadcast %cst_30 : f32 to vector<2x32xf32>
    %179 = arith.subf %178, %171 : vector<2x32xf32>
    %180 = arith.mulf %179, %177 : vector<2x32xf32>
    %181 = arith.mulf %171, %160 : vector<2x32xf32>
    %182 = arith.addf %180, %181 : vector<2x32xf32>
    %cst_31 = arith.constant dense<0.000000e+00> : vector<2x4xf32>
    %183 = tpu.matmul %182, %2, %cst_31 {dimension_numbers = #tpu.dot_dimension_numbers<[1], [0], [0], [1], [0, 0, 1, 1], [], []>} : vector<2x32xf32>, vector<32x4xf32>, vector<2x4xf32> -> vector<2x4xf32>
    %184 = vector.broadcast %5 : vector<1x4xf32> to vector<2x4xf32>
    %185 = arith.addf %183, %184 : vector<2x4xf32>
    %c0_32 = arith.constant 0 : index
    %c0_33 = arith.constant 0 : index
    %186 = vector.load %arg2[%c0_32, %c0_33] : memref<2x4xf32, #tpu.memory_space<vmem>>, vector<2x4xf32>
    tpu.vector_store %arg2[%c0_32, %c0_33], %185 {strides = array<i32>} : memref<2x4xf32, #tpu.memory_space<vmem>>, vector<2x4xf32>,
    return
  }
}

</mosaic_0001>

<bundles_post_ra>
// kernel: gru_classifier_forward.1
= control target key start
LH: loop header
LB: loop body
LE: loop exit
PB: predicated region body
PF: predicated region fallthrough
CT: control target
= control target key end

     0   :  { %7 = vsyncpa [#allocation3], 0  ;;  %s1456_s0 = inlined_call_operand.vmem [shape: f32[16,16], index: 0, kind: input, shape index: {}]   ;;  %s1457_s1 = inlined_call_operand.hbm [shape: f32[88,128], index: 1, kind: input, shape index: {}]   ;;  %s1458_s2 = inlined_call_operand.hbm [shape: f32[2,4], index: 2, kind: output, shape index: {}]  }
   0x1   :  { %8 = vsyncpa [#allocation4], 0  ;;  %s1268_s9 = smov [#allocation2]  }
   0x2   :  { %s16_s10 = sshll.u32 %s1268_s9, 4  ;;  %s17_s10 = int_to_ptr.vmem [resolvable:$true] %s16_s10 }
   0x3   :  { %s1232_s11 = scalar_lea.vmem %s17_s10, 1408  ;;  %p1237_p1 = scmp.lt.s32.totalorder %s17_s10, %s17_s10 }
   0x4   :  { %p1233_p0 = scmp.ne.s32.totalorder %s17_s10, %s1232_s11  ;;  %p1238_p2 = scmp.lt.s32.totalorder %s1232_s11, %s1232_s11 }
   0x6   :  { %p1239_p3 = por %p1238_p2, %p1237_p1 }
   0x8   :  { %p1240_p4 = pnand %p1239_p3, %p1233_p0 }
   0xa   :  { %1243 = shalt.err (!%p1240_p4)
}
   0xb   :  { %s1269_s12 = smov 128   ;;  %s1270_s13 = smov 8  }
   0xc   :  { %22 = dma.hbm_to_vmem [thread:$0]  %s1457_s1, 1408, %s17_s10, [#allocation3], %s1269_s12, %s1269_s12, %s1270_s13  }
   0xd   :  { %1264 = dma.done.wait [#allocation3], 1408  }
   0xe   :  { %1265 = vsyncadd [#allocation3], 4294965888  ;;  %vm45_vm0 = vcmask 130048   ;;  %v27_v0 = vld [vmem:[#allocation2 + $0x8] sm:$0xff]  ;;  %v26_v1 = vld [vmem:[#allocation2] sm:$0xff]  ;;  %v1272_v18 = vmov 0.0  }
   0xf   :  { %v39_v2 = vld [vmem:[%s1456_s0] sm:$0xff]  ;;  %1073 = vmatprep.subr.mxu0 %v27_v0  ;;  %v40_v3 = vld [vmem:[%s1456_s0 + $0x8] sm:$0xff]  ;;  %v1008_v4 = vld [vmem:[#allocation2 + $0x50] ss:$0 sm:$0xff]  ;;  %s1271_s0 = smov 64   ;;  %1080 = vmatprep.subr.mxu1 %v1272_v18  ;;  %vm1273_vm1 = vmmov 0  }
  0x10   :  { %1077 = vmatprep.mubr.msk.f32.mxu0 %vm45_vm0, %v39_v2  ;;  %1074 = vmatpush3.msra.mxu0 %v27_v0  ;;  %v1011_v12 = vld [vmem:[#allocation2 + $0x51] ss:$0 sm:$0xff]  ;;  %v1307_v17 = vld [vmem:[#allocation2 + $0x28] sm:$0xff]  ;;  %v1310_v19 = vld [vmem:[#allocation2 + $0x20] sm:$0xff]  ;;  %s1274_s1 = smov 96   ;;  %vm153_vm2 = vcmask 261120  }
  0x11   :  { %1075 = vmatprep.subr.mxu0 %v26_v1  ;;  %1088 = vmatprep.mubr.msk.f32.mxu1 %vm1273_vm1, %v1272_v18  ;;  %v1317_v20 = vld [vmem:[#allocation2 + $0x18] sm:$0xff]  ;;  %v1323_v21 = vld [vmem:[#allocation2 + $0x10] sm:$0xff]  ;;  %s1275_s20 = smov [#allocation5]   ;;  %vm991_vm3 = vcmask 25600  }
  0x12   :  { %1076 = vmatpush3.msra.mxu0 %v26_v1  ;;  %1081 = vmatpush3.msra.mxu1 %v1307_v17  ;;  %s999_s21 = sshll.u32 %s1275_s20, 4  ;;  %s1000_s21 = int_to_ptr.vmem [resolvable:$true] %s999_s21 }
  0x13   :  { %1078 = vmatmul.mubr.msk.f32.vlgmr.msra.gmra.mxu0 %vm45_vm0, %v40_v3  ;;  %1091 = vmatprep.subr.mxu0 %v1272_v18  ;;  %s1244_s22 = scalar_lea.vmem %s1000_s21, 32  ;;  %p1249_p6 = scmp.lt.s32.totalorder %s1000_s21, %s1000_s21 }
  0x14   :  { %1082 = vmatprep.subr.mxu1 %v1272_v18  ;;  %1092 = vmatpush3.msra.mxu0 %v1307_v17  ;;  %p1245_p5 = scmp.ne.s32.totalorder %s1000_s21, %s1244_s22  ;;  %p1250_p7 = scmp.lt.s32.totalorder %s1244_s22, %s1244_s22 }
  0x15   :  { %1083 = vmatpush3.msra.mxu1 %v1310_v19  ;;  %1093 = vmatprep.subr.mxu0 %v1272_v18 }
  0x16   :  { %1084 = vmatprep.subr.mxu1 %v1272_v18  ;;  %1094 = vmatpush3.msra.mxu0 %v1310_v19  ;;  %p1251_p8 = por %p1250_p7, %p1249_p6 }
  0x17   :  { %1085 = vmatpush3.msra.mxu1 %v1317_v20  ;;  %1095 = vmatprep.subr.mxu0 %v1272_v18 }
  0x18   :  { %1086 = vmatprep.subr.mxu1 %v1272_v18  ;;  %1096 = vmatpush3.msra.mxu0 %v1317_v20  ;;  %p1252_p9 = pnand %p1251_p8, %p1245_p5 }
  0x19   :  { %1087 = vmatpush3.msra.mxu1 %v1323_v21  ;;  %1097 = vmatprep.subr.mxu0 %v1272_v18 }
  0x1a   :  { %1098 = vmatpush3.msra.mxu0 %v1323_v21  ;;  %1099 = vmatprep.mubr.msk.f32.mxu0 %vm1273_vm1, %v1272_v18 }
  0x1b   :  { %1102 = vmatprep.subr.mxu1 %v1272_v18  ;;  %1113 = vmatprep.subr.mxu0 %v1272_v18 }
  0xd3   :  { %v1079_v5 = vpop.f32.mrf.mxu0 }
  0xd4   :  { %v1300_v6 = vadd.f32 %v1079_v5, %v1008_v4 }
  0xd5   :  { %v118_v7 = vpop.f32.mrf.mxu0 }
  0xd6   :  { %v1302_v8 = vadd.f32 %v1008_v4, %v118_v7 }
  0xd8   :  { %v1012_v9 = vmul.f32 -1.442695, %v1302_v8 }
  0xda   :  { %1176 = vpow2.f32 %v1012_v9 }
  0xe7   :  { %v1177_v10 = vpop.eup %1176 }
  0xe8   :  { %v134_v11 = vadd.f32 1.0, %v1177_v10 }
  0xea   :  { %1178 = vrcp.f32 %v134_v11 }
  0xf7   :  { %v1179_v13 = vpop.eup %1178 }
  0xf8   :  { %v137_v14 = vmul.f32 %v1179_v13, %v1011_v12  ;;  %v144_v23 = vsub.f32 1.0, %v1179_v13 }
  0xfa   :  { %139 = vrot.lane.b32.xlu0 %v137_v14, %s1271_s0 }
 0x16c   :  { %v140_v15 = vpop.permute.xlu0 %139 }
 0x16d   :  { %v142_v16 = vadd.f32 %v140_v15, %v1302_v8 }
 0x16f   :  { %1180 = vtanh.f32 %v142_v16 }
 0x17c   :  { %v1181_v22 = vpop.eup %1180 }
 0x17d   :  { %146 = vrot.lane.b32.xlu0 %v1181_v22, %s1274_s1 }
 0x1ef   :  { %v147_v24 = vpop.permute.xlu0 %146 }
 0x1f0   :  { %v149_v25 = vmul.f32 %v147_v24, %v144_v23 }
 0x1f2   :  { %151 = vrot.lane.b32.xlu1 %v149_v25, %s1274_s1  ;;  %v259_v43 = vrot.slane %v149_v25, 6 }
 0x1f6   :  { %237 = vrot.lane.b32.xlu1 %v1011_v12, %s1271_s0 }
 0x264   :  { %v152_v26 = vpop.permute.xlu1 %151 }
 0x265   :  { %1089 = vmatmul.mubr.msk.f32.vlgmr.msra.gmra.mxu1 %vm153_vm2, %v152_v26 }
 0x266   :  { %1103 = vmatpush3.msra.mxu1 %v1307_v17  ;;  %1110 = vmatprep.mubr.msk.f32.mxu1 %vm1273_vm1, %v1272_v18 }
 0x267   :  { %1104 = vmatprep.subr.mxu1 %v1272_v18 }
 0x268   :  { %1105 = vmatpush3.msra.mxu1 %v1310_v19  ;;  %v1351_v27 = vpop.permute.xlu1 %237 }
 0x269   :  { %1106 = vmatprep.subr.mxu1 %v1272_v18 }
 0x26a   :  { %1107 = vmatpush3.msra.mxu1 %v1317_v20 }
 0x26b   :  { %1108 = vmatprep.subr.mxu1 %v1272_v18 }
 0x26c   :  { %1109 = vmatpush3.msra.mxu1 %v1323_v21 }
 0x26d   :  { %1124 = vmatprep.subr.mxu1 %v1272_v18 }
 0x325   :  { %v222_v28 = vpop.f32.mrf.mxu1 }
 0x326   :  { %v240_v29 = vadd.f32 %v1351_v27, %v222_v28  ;;  %v227_v32 = vrot.slane %v222_v28, 6 }
 0x327   :  { %v1090_v30 = vpop.f32.mrf.mxu1 }
 0x328   :  { %v242_v31 = vrot.slane %v240_v29, 6  ;;  %v229_v33 = vadd.f32 %v227_v32, %v1302_v8 }
 0x32a   :  { %243 = vrot.lane.b32.xlu0 %v242_v31, %s1271_s0  ;;  %v1014_v34 = vmul.f32 -1.442695, %v229_v33 }
 0x32c   :  { %1182 = vpow2.f32 %v1014_v34 }
 0x339   :  { %v1183_v35 = vpop.eup %1182 }
 0x33a   :  { %v233_v36 = vadd.f32 1.0, %v1183_v35 }
 0x33c   :  { %1184 = vrcp.f32 %v233_v36 }
 0x349   :  { %v1185_v37 = vpop.eup %1184 }
 0x34a   :  { %v253_v44 = vsub.f32 1.0, %v1185_v37  ;;  %v261_v47 = vmul.f32 %v1185_v37, %v259_v43 }
 0x39c   :  { %v244_v38 = vpop.permute.xlu0 %243 }
 0x39d   :  { %v246_v39 = vmul.f32 %v1185_v37, %v244_v38 }
 0x39f   :  { %248 = vrot.lane.b32.xlu1 %v246_v39, %s1271_s0 }
 0x411   :  { %v249_v40 = vpop.permute.xlu1 %248 }
 0x412   :  { %v251_v41 = vadd.f32 %v249_v40, %v1302_v8 }
 0x414   :  { %1186 = vtanh.f32 %v251_v41 }
 0x421   :  { %v1187_v42 = vpop.eup %1186 }
 0x422   :  { %255 = vrot.lane.b32.xlu0 %v1187_v42, %s1274_s1 }
 0x494   :  { %v256_v45 = vpop.permute.xlu0 %255 }
 0x495   :  { %v258_v46 = vmul.f32 %v256_v45, %v253_v44 }
 0x497   :  { %v262_v48 = vadd.f32 %v261_v47, %v258_v46 }
 0x499   :  { %v264_v49 = vrot.slane %v262_v48, 2  ;;  %v368_v2 = vrot.slane %v262_v48, 6 }
 0x49b   :  { %265 = vrot.lane.b32.xlu1 %v264_v49, %s1274_s1 }
 0x50d   :  { %v266_v50 = vpop.permute.xlu1 %265 }
 0x50e   :  { %1100 = vmatmul.mubr.msk.f32.vlgmr.msra.gmra.mxu0 %vm153_vm2, %v266_v50 }
 0x50f   :  { %1114 = vmatpush3.msra.mxu0 %v1307_v17  ;;  %1121 = vmatprep.mubr.msk.f32.mxu0 %vm1273_vm1, %v1272_v18 }
 0x510   :  { %1115 = vmatprep.subr.mxu0 %v1272_v18 }
 0x511   :  { %1116 = vmatpush3.msra.mxu0 %v1310_v19 }
 0x512   :  { %1117 = vmatprep.subr.mxu0 %v1272_v18 }
 0x513   :  { %1118 = vmatpush3.msra.mxu0 %v1317_v20 }
 0x514   :  { %1119 = vmatprep.subr.mxu0 %v1272_v18 }
 0x515   :  { %1120 = vmatpush3.msra.mxu0 %v1323_v21 }
 0x516   :  { %1135 = vmatprep.subr.mxu0 %v1272_v18 }
 0x5ce   :  { %v335_v51 = vpop.f32.mrf.mxu0 }
 0x5cf   :  { %v349_v52 = vadd.f32 %v335_v51, %v1351_v27  ;;  %v340_v55 = vrot.slane %v335_v51, 4 }
 0x5d0   :  { %v1101_v53 = vpop.f32.mrf.mxu0 }
 0x5d1   :  { %v351_v54 = vrot.slane %v349_v52, 4  ;;  %v342_v56 = vadd.f32 %v340_v55, %v1302_v8 }
 0x5d3   :  { %352 = vrot.lane.b32.xlu0 %v351_v54, %s1271_s0  ;;  %v1016_v57 = vmul.f32 -1.442695, %v342_v56 }
 0x5d5   :  { %1188 = vpow2.f32 %v1016_v57 }
 0x5e2   :  { %v1189_v58 = vpop.eup %1188 }
 0x5e3   :  { %v346_v59 = vadd.f32 1.0, %v1189_v58 }
 0x5e5   :  { %1190 = vrcp.f32 %v346_v59 }
 0x5f2   :  { %v1191_v60 = vpop.eup %1190 }
 0x5f3   :  { %v362_v3 = vsub.f32 1.0, %v1191_v60  ;;  %v370_v5 = vmul.f32 %v1191_v60, %v368_v2 }
 0x645   :  { %v353_v61 = vpop.permute.xlu0 %352 }
 0x646   :  { %v355_v62 = vmul.f32 %v1191_v60, %v353_v61 }
 0x648   :  { %357 = vrot.lane.b32.xlu1 %v355_v62, %s1271_s0 }
 0x6ba   :  { %v358_v63 = vpop.permute.xlu1 %357 }
 0x6bb   :  { %v360_v0 = vadd.f32 %v358_v63, %v1302_v8 }
 0x6bd   :  { %1192 = vtanh.f32 %v360_v0 }
 0x6ca   :  { %v1193_v1 = vpop.eup %1192 }
 0x6cb   :  { %364 = vrot.lane.b32.xlu0 %v1193_v1, %s1274_s1 }
 0x73d   :  { %v365_v4 = vpop.permute.xlu0 %364 }
 0x73e   :  { %v367_v7 = vmul.f32 %v365_v4, %v362_v3 }
 0x740   :  { %v371_v9 = vadd.f32 %v370_v5, %v367_v7 }
 0x742   :  { %v373_v10 = vrot.slane %v371_v9, 4  ;;  %v477_v33 = vrot.slane %v371_v9, 6 }
 0x744   :  { %374 = vrot.lane.b32.xlu1 %v373_v10, %s1274_s1 }
 0x7b6   :  { %v375_v11 = vpop.permute.xlu1 %374 }
 0x7b7   :  { %1111 = vmatmul.mubr.msk.f32.vlgmr.msra.gmra.mxu1 %vm153_vm2, %v375_v11 }
 0x7b8   :  { %1125 = vmatpush3.msra.mxu1 %v1307_v17  ;;  %1132 = vmatprep.mubr.msk.f32.mxu1 %vm1273_vm1, %v1272_v18 }
 0x7b9   :  { %1126 = vmatprep.subr.mxu1 %v1272_v18 }
 0x7ba   :  { %1127 = vmatpush3.msra.mxu1 %v1310_v19 }
 0x7bb   :  { %1128 = vmatprep.subr.mxu1 %v1272_v18 }
 0x7bc   :  { %1129 = vmatpush3.msra.mxu1 %v1317_v20 }
 0x7bd   :  { %1130 = vmatprep.subr.mxu1 %v1272_v18 }
 0x7be   :  { %1131 = vmatpush3.msra.mxu1 %v1323_v21 }
 0x7bf   :  { %1146 = vmatprep.subr.mxu1 %v1272_v18 }
 0x877   :  { %v444_v12 = vpop.f32.mrf.mxu1 }
 0x878   :  { %v458_v13 = vadd.f32 %v444_v12, %v1351_v27  ;;  %v449_v16 = vrot.slane %v444_v12, 2 }
 0x879   :  { %v1112_v14 = vpop.f32.mrf.mxu1 }
 0x87a   :  { %v460_v15 = vrot.slane %v458_v13, 2  ;;  %v451_v22 = vadd.f32 %v449_v16, %v1302_v8 }
 0x87c   :  { %461 = vrot.lane.b32.xlu0 %v460_v15, %s1271_s0  ;;  %v1018_v23 = vmul.f32 -1.442695, %v451_v22 }
 0x87e   :  { %1194 = vpow2.f32 %v1018_v23 }
 0x88b   :  { %v1195_v24 = vpop.eup %1194 }
 0x88c   :  { %v455_v25 = vadd.f32 1.0, %v1195_v24 }
 0x88e   :  { %1196 = vrcp.f32 %v455_v25 }
 0x89b   :  { %v1197_v26 = vpop.eup %1196 }
 0x89c   :  { %v471_v34 = vsub.f32 1.0, %v1197_v26  ;;  %v479_v36 = vmul.f32 %v1197_v26, %v477_v33 }
 0x8ee   :  { %v462_v28 = vpop.permute.xlu0 %461 }
 0x8ef   :  { %v464_v29 = vmul.f32 %v1197_v26, %v462_v28 }
 0x8f1   :  { %466 = vrot.lane.b32.xlu1 %v464_v29, %s1271_s0 }
 0x963   :  { %v467_v30 = vpop.permute.xlu1 %466 }
 0x964   :  { %v469_v31 = vadd.f32 %v467_v30, %v1302_v8 }
 0x966   :  { %1198 = vtanh.f32 %v469_v31 }
 0x973   :  { %v1199_v32 = vpop.eup %1198 }
 0x974   :  { %473 = vrot.lane.b32.xlu0 %v1199_v32, %s1274_s1 }
 0x9e6   :  { %v474_v35 = vpop.permute.xlu0 %473 }
 0x9e7   :  { %v476_v37 = vmul.f32 %v474_v35, %v471_v34 }
 0x9e9   :  { %v480_v38 = vadd.f32 %v479_v36, %v476_v37 }
 0x9eb   :  { %v482_v39 = vrot.slane %v480_v38, 6 }
 0x9ed   :  { %483 = vrot.lane.b32.xlu1 %v482_v39, %s1274_s1 }
 0xa5f   :  { %v484_v40 = vpop.permute.xlu1 %483 }
 0xa60   :  { %1122 = vmatmul.mubr.msk.f32.vlgmr.msra.gmra.mxu0 %vm153_vm2, %v484_v40 }
 0xa61   :  { %1136 = vmatpush3.msra.mxu0 %v1307_v17  ;;  %1143 = vmatprep.mubr.msk.f32.mxu0 %vm1273_vm1, %v1272_v18 }
 0xa62   :  { %1137 = vmatprep.subr.mxu0 %v1272_v18 }
 0xa63   :  { %1138 = vmatpush3.msra.mxu0 %v1310_v19 }
 0xa64   :  { %1139 = vmatprep.subr.mxu0 %v1272_v18 }
 0xa65   :  { %1140 = vmatpush3.msra.mxu0 %v1317_v20 }
 0xa66   :  { %1141 = vmatprep.subr.mxu0 %v1272_v18 }
 0xa67   :  { %1142 = vmatpush3.msra.mxu0 %v1323_v21 }
 0xa68   :  { %1157 = vmatprep.subr.mxu0 %v1272_v18 }
 0xb20   :  { %v553_v8 = vpop.f32.mrf.mxu0 }
 0xb21   :  { %v564_v41 = vadd.f32 %v553_v8, %v1351_v27  ;;  %v557_v43 = vadd.f32 %v553_v8, %v1300_v6 }
 0xb22   :  { %v1123_v42 = vpop.f32.mrf.mxu0 }
 0xb23   :  { %566 = vrot.lane.b32.xlu0 %v564_v41, %s1271_s0  ;;  %v1020_v44 = vmul.f32 -1.442695, %v557_v43 }
 0xb25   :  { %1200 = vpow2.f32 %v1020_v44 }
 0xb32   :  { %v1201_v45 = vpop.eup %1200 }
 0xb33   :  { %v561_v46 = vadd.f32 1.0, %v1201_v45 }
 0xb35   :  { %1202 = vrcp.f32 %v561_v46 }
 0xb42   :  { %v1203_v47 = vpop.eup %1202 }
 0xb43   :  { %v576_v53 = vsub.f32 1.0, %v1203_v47  ;;  %v583_v55 = vmul.f32 %v1203_v47, %v482_v39 }
 0xb95   :  { %v567_v48 = vpop.permute.xlu0 %566 }
 0xb96   :  { %v569_v49 = vmul.f32 %v1203_v47, %v567_v48 }
 0xb98   :  { %571 = vrot.lane.b32.xlu1 %v569_v49, %s1271_s0 }
 0xc0a   :  { %v572_v50 = vpop.permute.xlu1 %571 }
 0xc0b   :  { %v574_v51 = vadd.f32 %v572_v50, %v1300_v6 }
 0xc0d   :  { %1204 = vtanh.f32 %v574_v51 }
 0xc1a   :  { %v1205_v52 = vpop.eup %1204 }
 0xc1b   :  { %578 = vrot.lane.b32.xlu0 %v1205_v52, %s1274_s1 }
 0xc8d   :  { %v579_v54 = vpop.permute.xlu0 %578 }
 0xc8e   :  { %v581_v56 = vmul.f32 %v579_v54, %v576_v53 }
 0xc90   :  { %v584_v57 = vadd.f32 %v583_v55, %v581_v56 }
 0xc92   :  { %586 = vrot.lane.b32.xlu1 %v584_v57, %s1274_s1  ;;  %v689_v7 = vrot.slane %v584_v57, 6  ;;  %v35_v57 = vld [vmem:[#allocation2 + $0x48] sm:$0xff] }
 0xd04   :  { %v587_v58 = vpop.permute.xlu1 %586 }
 0xd05   :  { %1133 = vmatmul.mubr.msk.f32.vlgmr.msra.gmra.mxu1 %vm153_vm2, %v587_v58  ;;  %v34_v58 = vld [vmem:[#allocation2 + $0x40] sm:$0xff] }
 0xd06   :  { %1147 = vmatpush3.msra.mxu1 %v1307_v17  ;;  %1154 = vmatprep.mubr.msk.f32.mxu1 %vm1273_vm1, %v1272_v18 }
 0xd07   :  { %1148 = vmatprep.subr.mxu1 %v1272_v18 }
 0xd08   :  { %1149 = vmatpush3.msra.mxu1 %v1310_v19 }
 0xd09   :  { %1150 = vmatprep.subr.mxu1 %v1272_v18 }
 0xd0a   :  { %1151 = vmatpush3.msra.mxu1 %v1317_v20 }
 0xd0b   :  { %1152 = vmatprep.subr.mxu1 %v1272_v18 }
 0xd0c   :  { %1153 = vmatpush3.msra.mxu1 %v1323_v21 }
 0xdc5   :  { %v656_v59 = vpop.f32.mrf.mxu1 }
 0xdc6   :  { %v670_v60 = vadd.f32 %v656_v59, %v1351_v27  ;;  %v661_v62 = vrot.slane %v656_v59, 6  ;;  %v33_v59 = vld [vmem:[#allocation2 + $0x38] sm:$0xff] }
 0xdc7   :  { %v1134_v61 = vpop.f32.mrf.mxu1 }
 0xdc8   :  { %v672_v17 = vrot.slane %v670_v60, 6  ;;  %v663_v63 = vadd.f32 %v661_v62, %v1300_v6  ;;  %v32_v60 = vld [vmem:[#allocation2 + $0x30] sm:$0xff] }
 0xdca   :  { %673 = vrot.lane.b32.xlu0 %v672_v17, %s1271_s0  ;;  %v1022_v0 = vmul.f32 -1.442695, %v663_v63 }
 0xdcc   :  { %1206 = vpow2.f32 %v1022_v0 }
 0xdd9   :  { %v1207_v19 = vpop.eup %1206 }
 0xdda   :  { %v667_v1 = vadd.f32 1.0, %v1207_v19 }
 0xddc   :  { %1208 = vrcp.f32 %v667_v1 }
 0xde9   :  { %v1209_v20 = vpop.eup %1208 }
 0xdea   :  { %v683_v9 = vsub.f32 1.0, %v1209_v20  ;;  %v691_v12 = vmul.f32 %v1209_v20, %v689_v7 }
 0xe3c   :  { %v674_v2 = vpop.permute.xlu0 %673 }
 0xe3d   :  { %v676_v3 = vmul.f32 %v1209_v20, %v674_v2  ;;  %v1027_v2 = vld [vmem:[#allocation2 + $0x52] ss:$0 sm:$0xff] }
 0xe3f   :  { %678 = vrot.lane.b32.xlu1 %v676_v3, %s1271_s0 }
 0xeb1   :  { %v679_v21 = vpop.permute.xlu1 %678 }
 0xeb2   :  { %v681_v4 = vadd.f32 %v679_v21, %v1300_v6 }
 0xeb4   :  { %1210 = vtanh.f32 %v681_v4 }
 0xec1   :  { %v1211_v5 = vpop.eup %1210 }
 0xec2   :  { %685 = vrot.lane.b32.xlu0 %v1211_v5, %s1274_s1 }
 0xf34   :  { %v686_v10 = vpop.permute.xlu0 %685 }
 0xf35   :  { %v688_v11 = vmul.f32 %v686_v10, %v683_v9 }
 0xf37   :  { %v692_v13 = vadd.f32 %v691_v12, %v688_v11 }
 0xf39   :  { %v694_v14 = vrot.slane %v692_v13, 2  ;;  %v798_v37 = vrot.slane %v692_v13, 6 }
 0xf3b   :  { %695 = vrot.lane.b32.xlu1 %v694_v14, %s1274_s1 }
 0xfad   :  { %v696_v15 = vpop.permute.xlu1 %695 }
 0xfae   :  { %1144 = vmatmul.mubr.msk.f32.vlgmr.msra.gmra.mxu0 %vm153_vm2, %v696_v15 }
 0xfaf   :  { %1165 = vmatprep.mubr.msk.f32.mxu0 %vm1273_vm1, %v1272_v18  ;;  %1158 = vmatpush3.msra.mxu0 %v35_v57 }
 0xfb0   :  { %1159 = vmatprep.subr.mxu0 %v1272_v18 }
 0xfb1   :  { %1160 = vmatpush3.msra.mxu0 %v34_v58 }
 0xfb2   :  { %1161 = vmatprep.subr.mxu0 %v1272_v18 }
 0xfb3   :  { %1162 = vmatpush3.msra.mxu0 %v33_v59 }
 0xfb4   :  { %1163 = vmatprep.subr.mxu0 %v1272_v18 }
 0xfb5   :  { %1164 = vmatpush3.msra.mxu0 %v32_v60 }
0x106e   :  { %v765_v16 = vpop.f32.mrf.mxu0 }
0x106f   :  { %v779_v22 = vadd.f32 %v765_v16, %v1351_v27  ;;  %v770_v25 = vrot.slane %v765_v16, 4 }
0x1070   :  { %v1145_v23 = vpop.f32.mrf.mxu0 }
0x1071   :  { %v781_v24 = vrot.slane %v779_v22, 4  ;;  %v772_v26 = vadd.f32 %v770_v25, %v1300_v6 }
0x1073   :  { %782 = vrot.lane.b32.xlu0 %v781_v24, %s1271_s0  ;;  %v1024_v28 = vmul.f32 -1.442695, %v772_v26 }
0x1075   :  { %1212 = vpow2.f32 %v1024_v28 }
0x1082   :  { %v1213_v29 = vpop.eup %1212 }
0x1083   :  { %v776_v30 = vadd.f32 1.0, %v1213_v29 }
0x1085   :  { %1214 = vrcp.f32 %v776_v30 }
0x1092   :  { %v1215_v31 = vpop.eup %1214 }
0x1093   :  { %v792_v38 = vsub.f32 1.0, %v1215_v31  ;;  %v800_v40 = vmul.f32 %v1215_v31, %v798_v37 }
0x10e5   :  { %v783_v32 = vpop.permute.xlu0 %782 }
0x10e6   :  { %v785_v33 = vmul.f32 %v1215_v31, %v783_v32 }
0x10e8   :  { %787 = vrot.lane.b32.xlu1 %v785_v33, %s1271_s0 }
0x115a   :  { %v788_v34 = vpop.permute.xlu1 %787 }
0x115b   :  { %v790_v35 = vadd.f32 %v788_v34, %v1300_v6 }
0x115d   :  { %1216 = vtanh.f32 %v790_v35 }
0x116a   :  { %v1217_v36 = vpop.eup %1216 }
0x116b   :  { %794 = vrot.lane.b32.xlu0 %v1217_v36, %s1274_s1 }
0x11dd   :  { %v795_v39 = vpop.permute.xlu0 %794 }
0x11de   :  { %v797_v8 = vmul.f32 %v795_v39, %v792_v38 }
0x11e0   :  { %v801_v41 = vadd.f32 %v800_v40, %v797_v8 }
0x11e2   :  { %v803_v42 = vrot.slane %v801_v41, 4  ;;  %v907_v17 = vrot.slane %v801_v41, 6 }
0x11e4   :  { %804 = vrot.lane.b32.xlu1 %v803_v42, %s1274_s1 }
0x1256   :  { %v805_v43 = vpop.permute.xlu1 %804 }
0x1257   :  { %1155 = vmatmul.mubr.msk.f32.vlgmr.msra.gmra.mxu1 %vm153_vm2, %v805_v43 }
0x1317   :  { %v874_v44 = vpop.f32.mrf.mxu1 }
0x1318   :  { %v888_v45 = vadd.f32 %v874_v44, %v1351_v27  ;;  %v879_v48 = vrot.slane %v874_v44, 2 }
0x1319   :  { %v1156_v46 = vpop.f32.mrf.mxu1 }
0x131a   :  { %v890_v47 = vrot.slane %v888_v45, 2  ;;  %v881_v49 = vadd.f32 %v879_v48, %v1300_v6 }
0x131c   :  { %891 = vrot.lane.b32.xlu0 %v890_v47, %s1271_s0  ;;  %v1026_v50 = vmul.f32 -1.442695, %v881_v49 }
0x131e   :  { %1218 = vpow2.f32 %v1026_v50 }
0x132b   :  { %v1219_v51 = vpop.eup %1218 }
0x132c   :  { %v885_v52 = vadd.f32 1.0, %v1219_v51 }
0x132e   :  { %1220 = vrcp.f32 %v885_v52 }
0x133b   :  { %v1221_v53 = vpop.eup %1220 }
0x133c   :  { %v909_v63 = vmul.f32 %v1221_v53, %v907_v17 }
0x138e   :  { %v892_v54 = vpop.permute.xlu0 %891 }
0x138f   :  { %v894_v55 = vmul.f32 %v1221_v53, %v892_v54 }
0x1391   :  { %896 = vrot.lane.b32.xlu1 %v894_v55, %s1271_s0 }
0x1403   :  { %v897_v56 = vpop.permute.xlu1 %896 }
0x1404   :  { %v899_v27 = vadd.f32 %v897_v56, %v1300_v6  ;;  %v901_v6 = vsub.f32 1.0, %v1221_v53 }
0x1406   :  { %1222 = vtanh.f32 %v899_v27 }
0x1413   :  { %v1223_v61 = vpop.eup %1222 }
0x1414   :  { %903 = vrot.lane.b32.xlu0 %v1223_v61, %s1274_s1 }
0x1486   :  { %v904_v62 = vpop.permute.xlu0 %903 }
0x1487   :  { %v906_v0 = vmul.f32 %v904_v62, %v901_v6 }
0x1489   :  { %v910_v19 = vadd.f32 %v909_v63, %v906_v0 }
0x148b   :  { %v916_v1 = vrot.slane %v910_v19, 6 }
0x148d   :  { %917 = vrot.lane.b32.xlu1 %v916_v1, %s1274_s1 }
0x14ff   :  { %v918_v20 = vpop.permute.xlu1 %917 }
0x1500   :  { %1166 = vmatmul.mubr.msk.f32.vlgmr.msra.gmra.mxu0 %vm153_vm2, %v918_v20 }
0x15c0   :  { %v987_v3 = vpop.f32.mrf.mxu0 }
0x15c1   :  { %v988_v18 = vadd.f32 %v1027_v2, %v987_v3 }
0x15c2   :  { %v1167_v21 = vpop.f32.mrf.mxu0 }
0x15c3   :  { %992 = vst.msk [vmem:[#allocation5] sm:$0x3] %vm991_vm3, %v988_v18 }
0x15c4   :  { %1255 = shalt.err (!%p1252_p9)
}
0x15c5   :  { %1002 = dma.vmem_to_hbm [thread:$0]  %s1000_s21, 32, %s1458_s2, [#allocation4]  }
0x15c6   :  { %1266 = dma.done.wait [#allocation4], 32  }
0x15c7   :  { %1267 = vsyncadd [#allocation4], 4294967264 }
0x15c8   :  { %1006 = vsyncpa [#allocation3], 1 }
0x15c9   :  { %1007 = vsyncpa [#allocation4], 1 }

</bundles_post_ra>
